<compile_context>
chip_gen: v6e
topology: v6e:2x2x1
jax: 0.10.0
libtpu: 0.0.40
codegen_flags: <defaults>
</compile_context>

<pallas_src>
import jax
import jax.numpy as jnp
import numpy as np
from jax.experimental import pallas as pl
from jax.experimental.pallas import tpu as pltpu


def _obj_kernel(x_ref, halo_ref, sf_ref,
                wc0_ref, wc1_ref, wc2_ref, bc_ref, wT_ref, bT_ref,
                out_ref):
    """One grid step = one (batch element, L-tile)."""
    TL = x_ref.shape[1]

    x = x_ref[0]                                               # (TL, 4*dim)

    # Conv1d(k=3, padding=1) as three matmuls against the three weight taps.
    p0 = jnp.dot(x, wc0_ref[...], preferred_element_type=jnp.float32)  # tap for x[i-1]
    p1 = jnp.dot(x, wc1_ref[...], preferred_element_type=jnp.float32)  # tap for x[i]
    p2 = jnp.dot(x, wc2_ref[...], preferred_element_type=jnp.float32)  # tap for x[i+1]

    halo = halo_ref[0, 0]                                      # (2, 4*dim): [prev_row, next_row]
    prev_c = jnp.dot(halo[0:1, :], wc0_ref[...], preferred_element_type=jnp.float32)
    next_c = jnp.dot(halo[1:2, :], wc2_ref[...], preferred_element_type=jnp.float32)

    # Shift the small (TL, dim) products by +/-1 row; halo rows fill the edges.
    sm1 = jnp.concatenate([prev_c, p0[:TL - 1, :]], axis=0)    # x[i-1] @ wc0
    sp1 = jnp.concatenate([p2[1:, :], next_c], axis=0)         # x[i+1] @ wc2

    h = jnp.maximum(sm1 + p1 + sp1 + bc_ref[...], 0.0)         # (TL, dim), ReLU

    # Fused heads, computed transposed so the whole epilogue is lane-dense in TL:
    # sT = [lr1; lr2; lr3] @ h^T  -> (1+2C, TL)
    sT = jax.lax.dot_general(wT_ref[...], h, (((1,), (1,)), ((), ())),
                             preferred_element_type=jnp.float32)
    sT = jax.nn.sigmoid(sT + bT_ref[...])

    x1 = sT[0:1, :]                                            # sigmoid(lr1):        (1, TL)
    x23 = sT[1:, :]                                            # [sig(lr2); sig(lr3)] (2C, TL)
    out_ref[0] = x23 * sf_ref[0] * x1                          # [x2*sf1*x1; x3*sf2*x1]


def obj_model_forward(x, sf1, sf2, params, *, tile_l=512):
    """x: (B, L, 4*dim); sf1, sf2: (B, L, num_classes). Returns (x2, x3) as (B, L, C)."""
    B, L, Cin = x.shape
    W_conv = params["conv_w"]                 # (dim, 4*dim, 3) -- PyTorch Conv1d layout
    dim = W_conv.shape[0]
    C = params["lr2_w"].shape[0]
    C2 = 2 * C

    # ---- sequence tile selection (lane-dense output needs TL % 128 == 0 or TL == L_pad)
    if L <= tile_l:
        TL = max(8, -(-L // 8) * 8)           # round L up to a multiple of 8
    else:
        TL = max(128, (tile_l // 128) * 128)
    L_pad = -(-L // TL) * TL
    nT = L_pad // TL

    # ---- operand prep (layout plumbing; everything except x is tiny) --------------
    x = x.astype(jnp.float32)
    if L_pad != L:
        x = jnp.pad(x, ((0, 0), (0, L_pad - L), (0, 0)))       # only in the remainder case

    # Per-tile halo rows: [x[t*TL - 1], x[(t+1)*TL]] with zeros at the sequence ends.
    zero_row = jnp.zeros((B, 1, Cin), jnp.float32)
    if nT > 1:
        prev_rows = jnp.concatenate([zero_row, x[:, TL - 1:L_pad - 1:TL, :]], axis=1)
        next_rows = jnp.concatenate([x[:, TL:L_pad:TL, :], zero_row], axis=1)
    else:
        prev_rows, next_rows = zero_row, zero_row
    halo = jnp.stack([prev_rows, next_rows], axis=2)           # (B, nT, 2, Cin)

    # shareFeat1/2 packed lane-dense: (B, 2C, L_pad).
    sf = jnp.concatenate([jnp.swapaxes(sf1, 1, 2), jnp.swapaxes(sf2, 1, 2)],
                         axis=1).astype(jnp.float32)
    if L_pad != L:
        sf = jnp.pad(sf, ((0, 0), (0, 0), (0, L_pad - L)))

    # Conv taps in (Cin, dim) layout; fused head weights (1+2C, dim) and bias (1+2C, 1).
    wc0 = jnp.transpose(W_conv[:, :, 0]).astype(jnp.float32)
    wc1 = jnp.transpose(W_conv[:, :, 1]).astype(jnp.float32)
    wc2 = jnp.transpose(W_conv[:, :, 2]).astype(jnp.float32)
    bc = params["conv_b"].reshape(1, dim).astype(jnp.float32)
    wT = jnp.concatenate([params["lr1_w"], params["lr2_w"], params["lr3_w"]],
                         axis=0).astype(jnp.float32)
    bT = jnp.concatenate([params["lr1_b"], params["lr2_b"], params["lr3_b"]],
                         axis=0).reshape(1 + C2, 1).astype(jnp.float32)
    # NOTE: bf16 inputs would halve the dominant x HBM stream, but casting f32 inputs
    # in the wrapper adds a full extra HBM pass, so it only pays if x arrives in bf16.

    def full(a):
        nd = a.ndim
        return pl.BlockSpec(a.shape, lambda b, t, _nd=nd: (0,) * _nd)

    flops = 2 * B * L_pad * (3 * Cin * dim + dim * (1 + C2)) + 4 * B * L_pad * (1 + C2)
    cost = pl.CostEstimate(
        flops=flops,
        transcendentals=B * L_pad * (1 + C2),
        bytes_accessed=4 * (x.size + halo.size + sf.size + 3 * wc0.size
                            + bc.size + wT.size + bT.size + B * C2 * L_pad))

    out_packed = pl.pallas_call(
        _obj_kernel,
        grid=(B, nT),
        in_specs=[
            pl.BlockSpec((1, TL, Cin), lambda b, t: (b, t, 0)),      # x tile
            pl.BlockSpec((1, 1, 2, Cin), lambda b, t: (b, t, 0, 0)), # halo rows
            pl.BlockSpec((1, C2, TL), lambda b, t: (b, 0, t)),       # packed shareFeat (lane-dense)
            full(wc0), full(wc1), full(wc2), full(bc), full(wT), full(bT),
        ],
        out_specs=pl.BlockSpec((1, C2, TL), lambda b, t: (b, 0, t)), # packed output (lane-dense)
        out_shape=jax.ShapeDtypeStruct((B, C2, L_pad), jnp.float32),
        compiler_params=pltpu.CompilerParams(
            dimension_semantics=("parallel", "parallel"),
            vmem_limit_bytes=32 * 1024 * 1024),
        cost_estimate=cost,
    )(x, halo, sf, wc0, wc1, wc2, bc, wT, bT)

    out2 = jnp.swapaxes(out_packed[:, :C, :L], 1, 2)           # (B, L, C)
    out3 = jnp.swapaxes(out_packed[:, C:, :L], 1, 2)           # (B, L, C)
    return out2, out3


def ref_forward(x, sf1, sf2, params):
    """Pure-JAX reference in PyTorch conventions (for correctness check)."""
    xt = jnp.transpose(x, (0, 2, 1))                           # (B, 4*dim, L)
    y = jax.lax.conv_general_dilated(
        xt, params["conv_w"], window_strides=(1,), padding=((1, 1),),
        dimension_numbers=("NCH", "OIH", "NCH"))
    y = y + params["conv_b"][None, :, None]
    h = jnp.transpose(jax.nn.relu(y), (0, 2, 1))               # (B, L, dim)
    x1 = jax.nn.sigmoid(h @ params["lr1_w"].T + params["lr1_b"])
    x2 = jax.nn.sigmoid(h @ params["lr2_w"].T + params["lr2_b"])
    x3 = jax.nn.sigmoid(h @ params["lr3_w"].T + params["lr3_b"])
    return x2 * sf1 * x1, x3 * sf2 * x1


if __name__ == "__main__":
    dim, num_classes, B = 32, 4, 2
    key = jax.random.PRNGKey(0)
    ks = jax.random.split(key, 8)

    # Deterministic synthetic parameters (shapes from ObjModel.__init__).
    params = {
        "conv_w": 0.1 * jax.random.normal(ks[0], (dim, 4 * dim, 3), jnp.float32),
        "conv_b": 0.1 * jax.random.normal(ks[1], (dim,), jnp.float32),
        "lr1_w": 0.1 * jax.random.normal(ks[2], (1, dim), jnp.float32),
        "lr1_b": 0.1 * jax.random.normal(ks[3], (1,), jnp.float32),
        "lr2_w": 0.1 * jax.random.normal(ks[4], (num_classes, dim), jnp.float32),
        "lr2_b": 0.1 * jax.random.normal(ks[5], (num_classes,), jnp.float32),
        "lr3_w": 0.1 * jax.random.normal(ks[6], (num_classes, dim), jnp.float32),
        "lr3_b": 0.1 * jax.random.normal(ks[7], (num_classes,), jnp.float32),
    }

    def run_case(L, tile_l):
        kx, k1, k2 = jax.random.split(jax.random.fold_in(key, L), 3)
        x = jax.random.normal(kx, (B, L, 4 * dim), jnp.float32)
        sf1 = jax.random.uniform(k1, (B, L, num_classes), jnp.float32)
        sf2 = jax.random.uniform(k2, (B, L, num_classes), jnp.float32)
        out2, out3 = obj_model_forward(x, sf1, sf2, params, tile_l=tile_l)
        jax.block_until_ready((out2, out3))
        r2, r3 = ref_forward(x, sf1, sf2, params)
        assert out2.shape == (B, L, num_classes) and out3.shape == (B, L, num_classes)
        assert np.allclose(np.asarray(out2), np.asarray(r2), atol=1e-5, rtol=1e-5)
        assert np.allclose(np.asarray(out3), np.asarray(r3), atol=1e-5, rtol=1e-5)

    run_case(L=8, tile_l=512)      # single tile (TL == L), halo is all zeros
    run_case(L=256, tile_l=128)    # multi-tile path: real halo rows between tiles
    run_case(L=200, tile_l=128)    # multi-tile + remainder padding path
    print("KERNEL_OK")
</pallas_src>

<mosaic_0001>
module attributes {stable_mosaic.version = 11 : i64} {
  func.func @_obj_kernel(%arg0: i32, %arg1: i32, %arg2: memref<1x8x128xf32, #tpu.memory_space<vmem>>, %arg3: memref<1x1x2x128xf32, #tpu.memory_space<vmem>>, %arg4: memref<1x8x8xf32, #tpu.memory_space<vmem>>, %arg5: memref<128x32xf32, #tpu.memory_space<vmem>>, %arg6: memref<128x32xf32, #tpu.memory_space<vmem>>, %arg7: memref<128x32xf32, #tpu.memory_space<vmem>>, %arg8: memref<1x32xf32, #tpu.memory_space<vmem>>, %arg9: memref<9x32xf32, #tpu.memory_space<vmem>>, %arg10: memref<9x1xf32, #tpu.memory_space<vmem>>, %arg11: memref<1x8x8xf32, #tpu.memory_space<vmem>>) attributes {dimension_semantics = [#tpu.dimension_semantics<parallel>, #tpu.dimension_semantics<parallel>], iteration_bounds = array<i64: 2, 1>, scalar_prefetch = 0 : i64, scratch_operands = 0 : i64, tpu.core_type = #tpu.core_type<tc>, window_params = [{transform_indices = @transform_0, window_bounds = array<i64: 1, 8, 128>}, {transform_indices = @transform_1, window_bounds = array<i64: 1, 1, 2, 128>}, {transform_indices = @transform_2, window_bounds = array<i64: 1, 8, 8>}, {pipeline_mode = #tpu.pipeline_mode<synchronous>, transform_indices = @transform_3, window_bounds = array<i64: 128, 32>}, {pipeline_mode = #tpu.pipeline_mode<synchronous>, transform_indices = @transform_4, window_bounds = array<i64: 128, 32>}, {pipeline_mode = #tpu.pipeline_mode<synchronous>, transform_indices = @transform_5, window_bounds = array<i64: 128, 32>}, {pipeline_mode = #tpu.pipeline_mode<synchronous>, transform_indices = @transform_6, window_bounds = array<i64: 1, 32>}, {pipeline_mode = #tpu.pipeline_mode<synchronous>, transform_indices = @transform_7, window_bounds = array<i64: 9, 32>}, {pipeline_mode = #tpu.pipeline_mode<synchronous>, transform_indices = @transform_8, window_bounds = array<i64: 9, 1>}, {transform_indices = @transform_9, window_bounds = array<i64: 1, 8, 8>}]} {
    %c0 = arith.constant 0 : index
    %c0_0 = arith.constant 0 : index
    %c0_1 = arith.constant 0 : index
    %0 = vector.load %arg2[%c0, %c0_0, %c0_1] : memref<1x8x128xf32, #tpu.memory_space<vmem>>, vector<1x8x128xf32>
    %1 = vector.shape_cast %0 : vector<1x8x128xf32> to vector<8x128xf32>
    %c0_2 = arith.constant 0 : index
    %c0_3 = arith.constant 0 : index
    %2 = vector.load %arg5[%c0_2, %c0_3] : memref<128x32xf32, #tpu.memory_space<vmem>>, vector<128x32xf32>
    %cst = arith.constant dense<0.000000e+00> : vector<8x32xf32>
    %3 = tpu.matmul %1, %2, %cst {dimension_numbers = #tpu.dot_dimension_numbers<[1], [0], [0], [1], [0, 0, 1, 1], [], []>} : vector<8x128xf32>, vector<128x32xf32>, vector<8x32xf32> -> vector<8x32xf32>
    %c0_4 = arith.constant 0 : index
    %c0_5 = arith.constant 0 : index
    %4 = vector.load %arg6[%c0_4, %c0_5] : memref<128x32xf32, #tpu.memory_space<vmem>>, vector<128x32xf32>
    %cst_6 = arith.constant dense<0.000000e+00> : vector<8x32xf32>
    %5 = tpu.matmul %1, %4, %cst_6 {dimension_numbers = #tpu.dot_dimension_numbers<[1], [0], [0], [1], [0, 0, 1, 1], [], []>} : vector<8x128xf32>, vector<128x32xf32>, vector<8x32xf32> -> vector<8x32xf32>
    %c0_7 = arith.constant 0 : index
    %c0_8 = arith.constant 0 : index
    %6 = vector.load %arg7[%c0_7, %c0_8] : memref<128x32xf32, #tpu.memory_space<vmem>>, vector<128x32xf32>
    %cst_9 = arith.constant dense<0.000000e+00> : vector<8x32xf32>
    %7 = tpu.matmul %1, %6, %cst_9 {dimension_numbers = #tpu.dot_dimension_numbers<[1], [0], [0], [1], [0, 0, 1, 1], [], []>} : vector<8x128xf32>, vector<128x32xf32>, vector<8x32xf32> -> vector<8x32xf32>
    %c0_10 = arith.constant 0 : index
    %c0_11 = arith.constant 0 : index
    %c0_12 = arith.constant 0 : index
    %c0_13 = arith.constant 0 : index
    %8 = vector.load %arg3[%c0_10, %c0_11, %c0_12, %c0_13] : memref<1x1x2x128xf32, #tpu.memory_space<vmem>>, vector<1x1x2x128xf32>
    %9 = vector.shape_cast %8 : vector<1x1x2x128xf32> to vector<2x128xf32>
    %10 = vector.extract_strided_slice %9 {offsets = [0, 0], sizes = [1, 128], strides = [1, 1]} : vector<2x128xf32> to vector<1x128xf32>
    %c0_14 = arith.constant 0 : index
    %c0_15 = arith.constant 0 : index
    %11 = vector.load %arg5[%c0_14, %c0_15] : memref<128x32xf32, #tpu.memory_space<vmem>>, vector<128x32xf32>
    %cst_16 = arith.constant dense<0.000000e+00> : vector<1x32xf32>
    %12 = tpu.matmul %10, %11, %cst_16 {dimension_numbers = #tpu.dot_dimension_numbers<[1], [0], [0], [1], [0, 0, 1, 1], [], []>} : vector<1x128xf32>, vector<128x32xf32>, vector<1x32xf32> -> vector<1x32xf32>
    %13 = vector.extract_strided_slice %9 {offsets = [1, 0], sizes = [1, 128], strides = [1, 1]} : vector<2x128xf32> to vector<1x128xf32>
    %c0_17 = arith.constant 0 : index
    %c0_18 = arith.constant 0 : index
    %14 = vector.load %arg7[%c0_17, %c0_18] : memref<128x32xf32, #tpu.memory_space<vmem>>, vector<128x32xf32>
    %cst_19 = arith.constant dense<0.000000e+00> : vector<1x32xf32>
    %15 = tpu.matmul %13, %14, %cst_19 {dimension_numbers = #tpu.dot_dimension_numbers<[1], [0], [0], [1], [0, 0, 1, 1], [], []>} : vector<1x128xf32>, vector<128x32xf32>, vector<1x32xf32> -> vector<1x32xf32>
    %16 = vector.extract_strided_slice %3 {offsets = [0, 0], sizes = [7, 32], strides = [1, 1]} : vector<8x32xf32> to vector<7x32xf32>
    %17 = tpu.concatenate %12, %16 in 0 : vector<1x32xf32>, vector<7x32xf32> -> vector<8x32xf32>
    %18 = vector.extract_strided_slice %7 {offsets = [1, 0], sizes = [7, 32], strides = [1, 1]} : vector<8x32xf32> to vector<7x32xf32>
    %19 = tpu.concatenate %18, %15 in 0 : vector<7x32xf32>, vector<1x32xf32> -> vector<8x32xf32>
    %20 = arith.addf %17, %5 : vector<8x32xf32>
    %21 = arith.addf %20, %19 : vector<8x32xf32>
    %c0_20 = arith.constant 0 : index
    %c0_21 = arith.constant 0 : index
    %22 = vector.load %arg8[%c0_20, %c0_21] : memref<1x32xf32, #tpu.memory_space<vmem>>, vector<1x32xf32>
    %23 = vector.broadcast %22 : vector<1x32xf32> to vector<8x32xf32>
    %24 = arith.addf %21, %23 : vector<8x32xf32>
    %cst_22 = arith.constant 0.000000e+00 : f32
    %25 = vector.broadcast %cst_22 : f32 to vector<8x32xf32>
    %26 = arith.maximumf %24, %25 : vector<8x32xf32>
    %c0_23 = arith.constant 0 : index
    %c0_24 = arith.constant 0 : index
    %27 = vector.load %arg9[%c0_23, %c0_24] : memref<9x32xf32, #tpu.memory_space<vmem>>, vector<9x32xf32>
    %cst_25 = arith.constant dense<0.000000e+00> : vector<9x8xf32>
    %28 = tpu.matmul %27, %26, %cst_25 {dimension_numbers = #tpu.dot_dimension_numbers<[1], [1], [0], [0], [0, 0, 1, 0], [], []>} : vector<9x32xf32>, vector<8x32xf32>, vector<9x8xf32> -> vector<9x8xf32>
    %c0_26 = arith.constant 0 : index
    %c0_27 = arith.constant 0 : index
    %29 = vector.load %arg10[%c0_26, %c0_27] : memref<9x1xf32, #tpu.memory_space<vmem>>, vector<9x1xf32>
    %30 = vector.broadcast %29 : vector<9x1xf32> to vector<9x8xf32>
    %31 = arith.addf %28, %30 : vector<9x8xf32>
    %32 = arith.negf %31 : vector<9x8xf32>
    %33 = math.exp %32 : vector<9x8xf32>
    %cst_28 = arith.constant 1.000000e+00 : f32
    %34 = vector.broadcast %cst_28 : f32 to vector<9x8xf32>
    %35 = arith.addf %34, %33 : vector<9x8xf32>
    %36 = arith.divf %34, %35 : vector<9x8xf32>
    %37 = vector.extract_strided_slice %36 {offsets = [0, 0], sizes = [1, 8], strides = [1, 1]} : vector<9x8xf32> to vector<1x8xf32>
    %38 = vector.extract_strided_slice %36 {offsets = [1, 0], sizes = [8, 8], strides = [1, 1]} : vector<9x8xf32> to vector<8x8xf32>
    %c0_29 = arith.constant 0 : index
    %c0_30 = arith.constant 0 : index
    %c0_31 = arith.constant 0 : index
    %39 = vector.load %arg4[%c0_29, %c0_30, %c0_31] : memref<1x8x8xf32, #tpu.memory_space<vmem>>, vector<1x8x8xf32>
    %40 = vector.shape_cast %39 : vector<1x8x8xf32> to vector<8x8xf32>
    %41 = arith.mulf %38, %40 : vector<8x8xf32>
    %42 = vector.broadcast %37 : vector<1x8xf32> to vector<8x8xf32>
    %43 = arith.mulf %41, %42 : vector<8x8xf32>
    %c0_32 = arith.constant 0 : index
    %c0_33 = arith.constant 0 : index
    %c0_34 = arith.constant 0 : index
    %44 = vector.load %arg11[%c0_32, %c0_33, %c0_34] : memref<1x8x8xf32, #tpu.memory_space<vmem>>, vector<1x8x8xf32>
    %45 = vector.shape_cast %44 : vector<1x8x8xf32> to vector<8x8xf32>
    %46 = vector.shape_cast %43 : vector<8x8xf32> to vector<1x8x8xf32>
    tpu.vector_store %arg11[%c0_32, %c0_33, %c0_34], %46 {strides = array<i32>} : memref<1x8x8xf32, #tpu.memory_space<vmem>>, vector<1x8x8xf32>,
    return
  }
  func.func @transform_0(%arg0: i32, %arg1: i32) -> (i32, i32, i32) {
    %c0_i32 = arith.constant 0 : i32
    %c0_i32_0 = arith.constant 0 : i32
    return %arg0, %arg1, %c0_i32 : i32, i32, i32
  }
  func.func @transform_1(%arg0: i32, %arg1: i32) -> (i32, i32, i32, i32) {
    %c0_i32 = arith.constant 0 : i32
    %c0_i32_0 = arith.constant 0 : i32
    %c0_i32_1 = arith.constant 0 : i32
    return %arg0, %arg1, %c0_i32, %c0_i32_0 : i32, i32, i32, i32
  }
  func.func @transform_2(%arg0: i32, %arg1: i32) -> (i32, i32, i32) {
    %c0_i32 = arith.constant 0 : i32
    %c0_i32_0 = arith.constant 0 : i32
    return %arg0, %c0_i32, %arg1 : i32, i32, i32
  }
  func.func @transform_3(%arg0: i32, %arg1: i32) -> (i32, i32) {
    %c0_i32 = arith.constant 0 : i32
    %c0_i32_0 = arith.constant 0 : i32
    %c0_i32_1 = arith.constant 0 : i32
    return %c0_i32, %c0_i32_0 : i32, i32
  }
  func.func @transform_4(%arg0: i32, %arg1: i32) -> (i32, i32) {
    %c0_i32 = arith.constant 0 : i32
    %c0_i32_0 = arith.constant 0 : i32
    %c0_i32_1 = arith.constant 0 : i32
    return %c0_i32, %c0_i32_0 : i32, i32
  }
  func.func @transform_5(%arg0: i32, %arg1: i32) -> (i32, i32) {
    %c0_i32 = arith.constant 0 : i32
    %c0_i32_0 = arith.constant 0 : i32
    %c0_i32_1 = arith.constant 0 : i32
    return %c0_i32, %c0_i32_0 : i32, i32
  }
  func.func @transform_6(%arg0: i32, %arg1: i32) -> (i32, i32) {
    %c0_i32 = arith.constant 0 : i32
    %c0_i32_0 = arith.constant 0 : i32
    %c0_i32_1 = arith.constant 0 : i32
    return %c0_i32, %c0_i32_0 : i32, i32
  }
  func.func @transform_7(%arg0: i32, %arg1: i32) -> (i32, i32) {
    %c0_i32 = arith.constant 0 : i32
    %c0_i32_0 = arith.constant 0 : i32
    %c0_i32_1 = arith.constant 0 : i32
    return %c0_i32, %c0_i32_0 : i32, i32
  }
  func.func @transform_8(%arg0: i32, %arg1: i32) -> (i32, i32) {
    %c0_i32 = arith.constant 0 : i32
    %c0_i32_0 = arith.constant 0 : i32
    %c0_i32_1 = arith.constant 0 : i32
    return %c0_i32, %c0_i32_0 : i32, i32
  }
  func.func @transform_9(%arg0: i32, %arg1: i32) -> (i32, i32, i32) {
    %c0_i32 = arith.constant 0 : i32
    %c0_i32_0 = arith.constant 0 : i32
    return %arg0, %c0_i32, %arg1 : i32, i32, i32
  }
}

</mosaic_0001>

<bundles_post_ra>
// kernel: tpu_custom_call.1
= control target key start
LH: loop header
LB: loop body
LE: loop exit
PB: predicated region body
PF: predicated region fallthrough
CT: control target
= control target key end

     0   :  { %14 = vsyncpa [#allocation3], 0  ;;  %s2046_s0 = inlined_call_operand.vmem [shape: f32[2,8,128], index: 0, kind: input, shape index: {}]   ;;  %s2047_s1 = inlined_call_operand.vmem [shape: f32[2,1,2,128], index: 1, kind: input, shape index: {}]   ;;  %s2048_s2 = inlined_call_operand.vmem [shape: f32[2,8,8], index: 2, kind: input, shape index: {}]   ;;  %s2049_s3 = inlined_call_operand.vmem [shape: f32[128,32], index: 3, kind: input, shape index: {}]   ;;  %s2050_s4 = inlined_call_operand.vmem [shape: f32[128,32], index: 4, kind: input, shape index: {}]   ;;  %s2051_s5 = inlined_call_operand.vmem [shape: f32[128,32], index: 5, kind: input, shape index: {}]   ;;  %s2052_s6 = inlined_call_operand.vmem [shape: f32[1,32], index: 6, kind: input, shape index: {}]   ;;  %s2053_s7 = inlined_call_operand.vmem [shape: f32[9,32], index: 7, kind: input, shape index: {}]   ;;  %s2054_s8 = inlined_call_operand.vmem [shape: f32[9,1], index: 8, kind: input, shape index: {}]   ;;  %s2055_s9 = inlined_call_operand.hbm [shape: f32[2,8,8], index: 9, kind: output, shape index: {}]  }
   0x1   :  { %16 = vsyncpa [#allocation3 + $0x1], 0  ;;  %s1565_s30 = smov 0   ;;  %s1567_s10 = smov 0  }
   0x2   :  { %s1569_s11 = smov 0   ;;  %s1571_s12 = smov 0  }
   0x3   :  { %s1573_s13 = smov 0   ;;  %s1575_s14 = smov 0  }
   0x4 LB: > { %s1079_s15 = sadd.s32 4294967295, %s1509_s14   ;;  %s1080_s16 = sadd.s32 4294967294, %s1509_s14   ;;  %s1509_s14 = sphi %s1575_s14, %s22_s14   ;;  %s1505_s13 = sphi %s1573_s13, %s2062_s13   ;;  %s1501_s12 = sphi %s1571_s12, %s2061_s12   ;;  %s1497_s11 = sphi %s1569_s11, %s2060_s11   ;;  %s1493_s10 = sphi %s1567_s10, %s2059_s10   ;;  %s1489_s30 = sphi %s1565_s30, %s2058_s30  }
   0x5   : > { %s34_s17 = sadd.s32 1, %s1505_s13  ;;  %s253_s18 = sadd.s32 1, %s1497_s11 }
   0x6   : > { %p36_p0 = scmp.ge.s32.totalorder %s34_s17, 2  ;;  %p263_p1 = scmp.ne.s32.totalorder %s1497_s11, %s1493_s10 }
   0x7   : > { %p264_p2 = scmp.eq.s32.totalorder %s1079_s15, 1  ;;  %p269_p3 = scmp.ne.s32.totalorder %s1493_s10, %s1489_s30 }
   0x8   : > { %s2064_s17 = smov (%p36_p0, %s34_s17), 0  ;;  %p270_p5 = scmp.eq.s32.totalorder %s1080_s16, 1 }
   0x9   : > { %p1605_p4 = por %p264_p2, %p263_p1  ;;  %s248_s20 = ssub.s32 %s1505_s13, %s2064_s17 }
   0xa   : > { %p1083_p6 = scmp.ge.s32.totalorder %s1509_s14, 1  ;;  %p251_p7 = scmp.eq.s32.totalorder %s248_s20, 0 }
   0xb   : > { %p1612_p8 = por %p270_p5, %p269_p3  ;;  %p336_p9 = scmp.lt.s32.totalorder %s1509_s14, 3 }
   0xc   : > { %s1618_s22 = scalar_select %p251_p7, %s1497_s11, %s253_s18  }
   0xd   : > { %p337_p10 = pnand %p1083_p6, %p336_p9 }
   0xe   : > { %p388_p11 = scmp.lt.s32.totalorder (!%p337_p10), %s1501_s12, 1  ;;  %s1514_s16 = smov (!%p337_p10), [#allocation2]  }
   0xf   : > { %340 = sbr.rel (%p337_p10) target bundleno = 574 (0x23e), region = 56 }
  0x14   : > { %v1623_v0 = vld [vmem:[%s2049_s3 + $0x78] sm:$0xff]  ;;  %v1511_v2 = vmov 0.0   ;;  %v1633_v3 = vld [vmem:[%s2049_s3 + $0x70] sm:$0xff]  ;;  %v1644_v5 = vld [vmem:[%s2049_s3 + $0x68] sm:$0xff]  ;;  %s1740_s23 = scalar_select %p388_p11, %s1501_s12, 1  ;;  %vm1512_vm0 = vmmov 0  }
  0x15   : > { %v511_v1 = vld [vmem:[%s2050_s4 + $0x78] sm:$0xff]  ;;  %1186 = vmatprep.subr.mxu0 %v1511_v2  ;;  %1221 = vmatprep.subr.mxu1 %v1511_v2  ;;  %v510_v4 = vld [vmem:[%s2050_s4 + $0x70] sm:$0xff]  ;;  %v509_v6 = vld [vmem:[%s2050_s4 + $0x68] sm:$0xff]  ;;  %vm850_vm1 = vcmask 261120   ;;  %v1513_v54 = vmov 0   ;;  %vm815_vm2 = vcmask 1040384  }
  0x16   : > { %1187 = vmatpush3.msra.mxu0 %v1623_v0  ;;  %1222 = vmatpush3.msra.mxu1 %v511_v1  ;;  %v1655_v7 = vld [vmem:[%s2049_s3 + $0x60] sm:$0xff]  ;;  %v1666_v9 = vld [vmem:[%s2049_s3 + $0x58] sm:$0xff]  ;;  %v1677_v11 = vld [vmem:[%s2049_s3 + $0x50] sm:$0xff]  ;;  %s1085_s18 = sshll.u32 %s1740_s23, 3  ;;  %s1086_s15 = sshll.u32 %s1740_s23, 1  ;;  %vm823_vm3 = vcmask 1046528  }
  0x17   : > { %1188 = vmatprep.subr.mxu0 %v1511_v2  ;;  %1223 = vmatprep.subr.mxu1 %v1511_v2  ;;  %v508_v8 = vld [vmem:[%s2050_s4 + $0x60] sm:$0xff]  ;;  %v507_v10 = vld [vmem:[%s2050_s4 + $0x58] sm:$0xff]  ;;  %v506_v12 = vld [vmem:[%s2050_s4 + $0x50] sm:$0xff]  ;;  %s394_s24 = scalar_lea.vmem %s2046_s0, %s1085_s18  ;;  %s401_s26 = scalar_lea.vmem %s2047_s1, %s1086_s15  ;;  %vm959_vm4 = vcmask 64513   ;;  %vm961_vm5 = vcmask 57344  }
  0x18   : > { %1189 = vmatpush3.msra.mxu0 %v1633_v3  ;;  %1224 = vmatpush3.msra.mxu1 %v510_v4  ;;  %v1688_v13 = vld [vmem:[%s2049_s3 + $0x48] sm:$0xff]  ;;  %v1699_v15 = vld [vmem:[%s2049_s3 + $0x40] sm:$0xff]  ;;  %v1710_v17 = vld [vmem:[%s2049_s3 + $0x38] sm:$0xff]  ;;  %s408_s20 = scalar_lea.vmem %s2048_s2, %s1085_s18 }
  0x19   : > { %1190 = vmatprep.subr.mxu0 %v1511_v2  ;;  %1225 = vmatprep.subr.mxu1 %v1511_v2  ;;  %v505_v14 = vld [vmem:[%s2050_s4 + $0x48] sm:$0xff]  ;;  %v504_v16 = vld [vmem:[%s2050_s4 + $0x40] sm:$0xff]  ;;  %v503_v18 = vld [vmem:[%s2050_s4 + $0x38] sm:$0xff] }
  0x1a   : > { %1191 = vmatpush3.msra.mxu0 %v1644_v5  ;;  %1226 = vmatpush3.msra.mxu1 %v509_v6  ;;  %v1722_v19 = vld [vmem:[%s2049_s3 + $0x30] sm:$0xff]  ;;  %v1733_v21 = vld [vmem:[%s2049_s3 + $0x28] sm:$0xff]  ;;  %v1747_v23 = vld [vmem:[%s2049_s3 + $0x20] sm:$0xff] }
  0x1b   : > { %1192 = vmatprep.subr.mxu0 %v1511_v2  ;;  %1227 = vmatprep.subr.mxu1 %v1511_v2  ;;  %v502_v20 = vld [vmem:[%s2050_s4 + $0x30] sm:$0xff]  ;;  %v501_v22 = vld [vmem:[%s2050_s4 + $0x28] sm:$0xff]  ;;  %v500_v24 = vld [vmem:[%s2050_s4 + $0x20] sm:$0xff] }
  0x1c   : > { %1193 = vmatpush3.msra.mxu0 %v1655_v7  ;;  %1228 = vmatpush3.msra.mxu1 %v508_v8  ;;  %v1758_v25 = vld [vmem:[%s2049_s3 + $0x18] sm:$0xff]  ;;  %v1770_v27 = vld [vmem:[%s2049_s3 + $0x10] sm:$0xff]  ;;  %v1781_v29 = vld [vmem:[%s2049_s3 + $0x8] sm:$0xff] }
  0x1d   : > { %1194 = vmatprep.subr.mxu0 %v1511_v2  ;;  %1229 = vmatprep.subr.mxu1 %v1511_v2  ;;  %v499_v26 = vld [vmem:[%s2050_s4 + $0x18] sm:$0xff]  ;;  %v498_v28 = vld [vmem:[%s2050_s4 + $0x10] sm:$0xff]  ;;  %v497_v30 = vld [vmem:[%s2050_s4 + $0x8] sm:$0xff] }
  0x1e   : > { %1195 = vmatpush3.msra.mxu0 %v1666_v9  ;;  %1230 = vmatpush3.msra.mxu1 %v507_v10  ;;  %v1797_v31 = vld [vmem:[%s2049_s3] sm:$0xff]  ;;  %v1814_v34 = vld [vmem:[%s2051_s5 + $0x78] sm:$0xff]  ;;  %v1824_v35 = vld [vmem:[%s2051_s5 + $0x70] sm:$0xff] }
  0x1f   : > { %1196 = vmatprep.subr.mxu0 %v1511_v2  ;;  %1231 = vmatprep.subr.mxu1 %v1511_v2  ;;  %v496_v32 = vld [vmem:[%s2050_s4] sm:$0xff]  ;;  %v1833_v36 = vld [vmem:[%s2051_s5 + $0x68] sm:$0xff]  ;;  %v1851_v38 = vld [vmem:[%s2051_s5 + $0x58] sm:$0xff] }
  0x20   : > { %1197 = vmatpush3.msra.mxu0 %v1677_v11  ;;  %1232 = vmatpush3.msra.mxu1 %v506_v12  ;;  %v1803_v33 = vld [vmem:[%s394_s24] sm:$0xff]  ;;  %v1860_v39 = vld [vmem:[%s2051_s5 + $0x50] sm:$0xff]  ;;  %v1869_v40 = vld [vmem:[%s2051_s5 + $0x48] sm:$0xff]  ;;  %s385_s24 = sand.u32 1, %s1493_s10  }
  0x21   : > { %1198 = vmatprep.subr.mxu0 %v1511_v2  ;;  %1233 = vmatprep.subr.mxu1 %v1511_v2  ;;  %v1842_v37 = vld [vmem:[%s2051_s5 + $0x60] sm:$0xff]  ;;  %v1887_v42 = vld [vmem:[%s2051_s5 + $0x38] sm:$0xff]  ;;  %v1896_v43 = vld [vmem:[%s2051_s5 + $0x30] sm:$0xff]  ;;  %s1084_s25 = sshll.u32 %s385_s24, 3  ;;  %s964_s15 = scalar_lea.sflag [#allocation3], %s385_s24 }
  0x22   : > { %1199 = vmatpush3.msra.mxu0 %v1688_v13  ;;  %1234 = vmatpush3.msra.mxu1 %v505_v14  ;;  %v1878_v41 = vld [vmem:[%s2051_s5 + $0x40] sm:$0xff]  ;;  %v587_v44 = vld [vmem:[%s2051_s5 + $0x28] sm:$0xff]  ;;  %v585_v46 = vld [vmem:[%s2051_s5 + $0x18] sm:$0xff]  ;;  %s387_s27 = scalar_lea.vmem [#allocation2], %s1084_s25 }
  0x23   : > { %1200 = vmatprep.subr.mxu0 %v1511_v2  ;;  %1235 = vmatprep.subr.mxu1 %v1511_v2  ;;  %v586_v45 = vld [vmem:[%s2051_s5 + $0x20] sm:$0xff]  ;;  %v584_v47 = vld [vmem:[%s2051_s5 + $0x10] sm:$0xff]  ;;  %v583_v48 = vld [vmem:[%s2051_s5 + $0x8] sm:$0xff]  ;;  %s978_s28 = sshll.u32 %s387_s27, 4  ;;  %s979_s28 = int_to_ptr.vmem [resolvable:$true] %s978_s28 }
  0x24   : > { %1201 = vmatpush3.msra.mxu0 %v1699_v15  ;;  %1236 = vmatpush3.msra.mxu1 %v504_v16  ;;  %v582_v49 = vld [vmem:[%s2051_s5] sm:$0xff]  ;;  %v839_v55 = vld [vmem:[%s2054_s8 + $0x8] sm:$0x1] }
  0x25   : > { %1202 = vmatprep.subr.mxu0 %v1511_v2  ;;  %1237 = vmatprep.subr.mxu1 %v1511_v2  ;;  %v668_v50 = vld [vmem:[%s401_s26] sm:$0x3]  ;;  %v837_v12 = vld [vmem:[%s2053_s7 + $0x8] sm:$0x1]  ;;  %s1095_s26 = sshll.u32 %s1501_s12, 7  ;;  %s1433_s12 = scalar_lea.vmem %s979_s28, 128 }
  0x26   : > { %1203 = vmatpush3.msra.mxu0 %v1710_v17  ;;  %1238 = vmatpush3.msra.mxu1 %v503_v18  ;;  %v740_v51 = vrot.slane %v668_v50, 1  ;;  %v836_v52 = vld [vmem:[%s2053_s7] sm:$0xff]  ;;  %s2006_s29 = scalar_lea.hbm %s2055_s9, %s1095_s26  ;;  %p1434_p12 = scmp.ne.s32.totalorder %s979_s28, %s1433_s12 }
  0x27   : > { %1204 = vmatprep.subr.mxu0 %v1511_v2  ;;  %1239 = vmatprep.subr.mxu1 %v1511_v2  ;;  %v838_v53 = vld [vmem:[%s2054_s8] sm:$0xff] }
  0x28   : > { %1205 = vmatpush3.msra.mxu0 %v1722_v19  ;;  %1240 = vmatpush3.msra.mxu1 %v502_v20  ;;  %v1088_v8 = vld [vmem:[%s2052_s6] ss:$0 sm:$0xff]  ;;  %p1435_p13 = pnand %p1434_p12, %p1605_p4 }
  0x29   : > { %1206 = vmatprep.subr.mxu0 %v1511_v2  ;;  %1241 = vmatprep.subr.mxu1 %v1511_v2 }
  0x2a   : > { %1207 = vmatpush3.msra.mxu0 %v1733_v21  ;;  %1242 = vmatpush3.msra.mxu1 %v501_v22  ;;  %p1436_p0 = pneg %p1435_p13 }
  0x2b   : > { %1208 = vmatprep.subr.mxu0 %v1511_v2  ;;  %1243 = vmatprep.subr.mxu1 %v1511_v2 }
  0x2c   : > { %1209 = vmatpush3.msra.mxu0 %v1747_v23  ;;  %1244 = vmatpush3.msra.mxu1 %v500_v24 }
  0x2d   : > { %1210 = vmatprep.subr.mxu0 %v1511_v2  ;;  %1245 = vmatprep.subr.mxu1 %v1511_v2 }
  0x2e   : > { %1211 = vmatpush3.msra.mxu0 %v1758_v25  ;;  %1246 = vmatpush3.msra.mxu1 %v499_v26 }
  0x2f   : > { %1212 = vmatprep.subr.mxu0 %v1511_v2  ;;  %1247 = vmatprep.subr.mxu1 %v1511_v2 }
  0x30   : > { %1213 = vmatpush3.msra.mxu0 %v1770_v27  ;;  %1248 = vmatpush3.msra.mxu1 %v498_v28 }
  0x31   : > { %1214 = vmatprep.subr.mxu0 %v1511_v2  ;;  %1249 = vmatprep.subr.mxu1 %v1511_v2 }
  0x32   : > { %1215 = vmatpush3.msra.mxu0 %v1781_v29  ;;  %1250 = vmatpush3.msra.mxu1 %v497_v30 }
  0x33   : > { %1216 = vmatprep.subr.mxu0 %v1511_v2  ;;  %1251 = vmatprep.subr.mxu1 %v1511_v2 }
  0x34   : > { %1217 = vmatpush3.msra.mxu0 %v1797_v31  ;;  %1218 = vmatprep.mubr.msk.f32.mxu0 %vm1512_vm0, %v1511_v2 }
  0x35   : > { %1252 = vmatpush3.msra.mxu1 %v496_v32  ;;  %1219 = vmatmul.mubr.f32.vlgmr.msra.gmra.mxu0 %v1803_v33 }
  0x36   : > { %1253 = vmatprep.mubr.msk.f32.mxu1 %vm1512_vm0, %v1511_v2  ;;  %1256 = vmatprep.subr.mxu0 %v1511_v2 }
  0x37   : > { %1291 = vmatprep.subr.mxu1 %v1511_v2  ;;  %1254 = vmatmul.mubr.f32.vlgmr.msra.gmra.mxu1 %v1803_v33 }
  0x38   : > { %1257 = vmatpush3.msra.mxu0 %v1814_v34  ;;  %1292 = vmatpush3.msra.mxu1 %v1623_v0 }
  0x39   : > { %1258 = vmatprep.subr.mxu0 %v1511_v2  ;;  %1293 = vmatprep.subr.mxu1 %v1511_v2 }
  0x3a   : > { %1259 = vmatpush3.msra.mxu0 %v1824_v35  ;;  %1294 = vmatpush3.msra.mxu1 %v1633_v3 }
  0x3b   : > { %1260 = vmatprep.subr.mxu0 %v1511_v2  ;;  %1295 = vmatprep.subr.mxu1 %v1511_v2 }
  0x3c   : > { %1261 = vmatpush3.msra.mxu0 %v1833_v36  ;;  %1296 = vmatpush3.msra.mxu1 %v1644_v5 }
  0x3d   : > { %1262 = vmatprep.subr.mxu0 %v1511_v2  ;;  %1297 = vmatprep.subr.mxu1 %v1511_v2 }
  0x3e   : > { %1263 = vmatpush3.msra.mxu0 %v1842_v37  ;;  %1298 = vmatpush3.msra.mxu1 %v1655_v7 }
  0x3f   : > { %1264 = vmatprep.subr.mxu0 %v1511_v2  ;;  %1299 = vmatprep.subr.mxu1 %v1511_v2 }
  0x40   : > { %1265 = vmatpush3.msra.mxu0 %v1851_v38  ;;  %1300 = vmatpush3.msra.mxu1 %v1666_v9 }
  0x41   : > { %1266 = vmatprep.subr.mxu0 %v1511_v2  ;;  %1301 = vmatprep.subr.mxu1 %v1511_v2 }
  0x42   : > { %1267 = vmatpush3.msra.mxu0 %v1860_v39  ;;  %1302 = vmatpush3.msra.mxu1 %v1677_v11 }
  0x43   : > { %1268 = vmatprep.subr.mxu0 %v1511_v2  ;;  %1303 = vmatprep.subr.mxu1 %v1511_v2 }
  0x44   : > { %1269 = vmatpush3.msra.mxu0 %v1869_v40  ;;  %1304 = vmatpush3.msra.mxu1 %v1688_v13 }
  0x45   : > { %1270 = vmatprep.subr.mxu0 %v1511_v2  ;;  %1305 = vmatprep.subr.mxu1 %v1511_v2 }
  0x46   : > { %1271 = vmatpush3.msra.mxu0 %v1878_v41  ;;  %1306 = vmatpush3.msra.mxu1 %v1699_v15 }
  0x47   : > { %1272 = vmatprep.subr.mxu0 %v1511_v2  ;;  %1307 = vmatprep.subr.mxu1 %v1511_v2 }
  0x48   : > { %1273 = vmatpush3.msra.mxu0 %v1887_v42  ;;  %1308 = vmatpush3.msra.mxu1 %v1710_v17 }
  0x49   : > { %1274 = vmatprep.subr.mxu0 %v1511_v2  ;;  %1309 = vmatprep.subr.mxu1 %v1511_v2 }
  0x4a   : > { %1275 = vmatpush3.msra.mxu0 %v1896_v43  ;;  %1310 = vmatpush3.msra.mxu1 %v1722_v19 }
  0x4b   : > { %1276 = vmatprep.subr.mxu0 %v1511_v2  ;;  %1311 = vmatprep.subr.mxu1 %v1511_v2 }
  0x4c   : > { %1277 = vmatpush3.msra.mxu0 %v587_v44  ;;  %1312 = vmatpush3.msra.mxu1 %v1733_v21 }
  0x4d   : > { %1278 = vmatprep.subr.mxu0 %v1511_v2  ;;  %1313 = vmatprep.subr.mxu1 %v1511_v2 }
  0x4e   : > { %1279 = vmatpush3.msra.mxu0 %v586_v45  ;;  %1314 = vmatpush3.msra.mxu1 %v1747_v23 }
  0x4f   : > { %1280 = vmatprep.subr.mxu0 %v1511_v2  ;;  %1315 = vmatprep.subr.mxu1 %v1511_v2 }
  0x50   : > { %1281 = vmatpush3.msra.mxu0 %v585_v46  ;;  %1316 = vmatpush3.msra.mxu1 %v1758_v25  ;;  %v953_v25 = vlaneseq }
  0x51   : > { %1282 = vmatprep.subr.mxu0 %v1511_v2  ;;  %1317 = vmatprep.subr.mxu1 %v1511_v2 }
  0x52   : > { %1283 = vmatpush3.msra.mxu0 %v584_v47  ;;  %1318 = vmatpush3.msra.mxu1 %v1770_v27  ;;  %v954_v26 = vshrl.u32 %v953_v25, 7  ;;  %v947_v27 = vld [vmem:[%s408_s20] sm:$0xff]  ;;  %s1437_s20 = sshll.u32 %s1514_s16, 4  ;;  %s1438_s20 = int_to_ptr.vmem [resolvable:$false] %s1437_s20 }
  0x53   : > { %1284 = vmatprep.subr.mxu0 %v1511_v2  ;;  %1319 = vmatprep.subr.mxu1 %v1511_v2  ;;  %v949_v28 = vrot.slane %v947_v27, 7  ;;  %s1439_s25 = scalar_lea.vmem %s1438_s20, 256  ;;  %p1440_p1 = scmp.lt.s32.totalorder %s979_s28, %s1438_s20 }
  0x54   : > { %1285 = vmatpush3.msra.mxu0 %v583_v48  ;;  %1320 = vmatpush3.msra.mxu1 %v1781_v29  ;;  %v955_v29 = vsub.s32 0, %v954_v26  ;;  %p1441_p2 = scmp.lt.s32.totalorder %s1439_s25, %s1433_s12 }
  0x55   : > { %1286 = vmatprep.subr.mxu0 %v1511_v2  ;;  %1321 = vmatprep.subr.mxu1 %v1511_v2 }
  0x56   : > { %1287 = vmatpush3.msra.mxu0 %v582_v49  ;;  %1288 = vmatprep.mubr.msk.f32.mxu0 %vm1512_vm0, %v1511_v2  ;;  %p1442_p3 = por %p1441_p2, %p1440_p1 }
  0x57   : > { %1322 = vmatpush3.msra.mxu1 %v1797_v31  ;;  %1323 = vmatprep.mubr.msk.f32.mxu1 %vm1512_vm0, %v1511_v2 }
  0x58   : > { %1289 = vmatmul.mubr.f32.vlgmr.msra.gmra.mxu0 %v1803_v33  ;;  %1324 = vmatmul.mubr.f32.vlgmr.msra.gmra.mxu1 %v668_v50  ;;  %p1443_p5 = pnand %p1442_p3, %p1436_p0 }
  0x59   : > { %1326 = vmatprep.subr.mxu0 %v1511_v2  ;;  %1358 = vmatprep.mubr.msk.f32.mxu0 %vm1512_vm0, %v1511_v2 }
  0x5a   : > { %1327 = vmatpush3.msra.mxu0 %v1814_v34  ;;  %1363 = vmatprep.mubr.msk.f32.mxu1 %vm850_vm1, %v836_v52 }
  0x5b   : > { %1328 = vmatprep.subr.mxu0 %v1511_v2  ;;  %1424 = vset.pattern.permute.xlu0 %v1513_v54 }
  0x5c   : > { %1329 = vmatpush3.msra.mxu0 %v1824_v35  ;;  %842 = vperm.xlu0 %1424, %v838_v53  }
  0x5d   : > { %1330 = vmatprep.subr.mxu0 %v1511_v2 }
  0x5e   : > { %1331 = vmatpush3.msra.mxu0 %v1833_v36 }
  0x5f   : > { %1332 = vmatprep.subr.mxu0 %v1511_v2 }
  0x60   : > { %1333 = vmatpush3.msra.mxu0 %v1842_v37  ;;  %847 = vperm.xlu0 %1424, %v839_v55  }
  0x61   : > { %1334 = vmatprep.subr.mxu0 %v1511_v2 }
  0x62   : > { %1335 = vmatpush3.msra.mxu0 %v1851_v38 }
  0x63   : > { %1336 = vmatprep.subr.mxu0 %v1511_v2 }
  0x64   : > { %1337 = vmatpush3.msra.mxu0 %v1860_v39 }
  0x65   : > { %1338 = vmatprep.subr.mxu0 %v1511_v2 }
  0x66   : > { %1339 = vmatpush3.msra.mxu0 %v1869_v40 }
  0x67   : > { %1340 = vmatprep.subr.mxu0 %v1511_v2 }
  0x68   : > { %1341 = vmatpush3.msra.mxu0 %v1878_v41 }
  0x69   : > { %1342 = vmatprep.subr.mxu0 %v1511_v2 }
  0x6a   : > { %1343 = vmatpush3.msra.mxu0 %v1887_v42 }
  0x6b   : > { %1344 = vmatprep.subr.mxu0 %v1511_v2 }
  0x6c   : > { %1345 = vmatpush3.msra.mxu0 %v1896_v43 }
  0x6d   : > { %1346 = vmatprep.subr.mxu0 %v1511_v2 }
  0x6e   : > { %1347 = vmatpush3.msra.mxu0 %v587_v44 }
  0x6f   : > { %1348 = vmatprep.subr.mxu0 %v1511_v2 }
  0x70   : > { %1349 = vmatpush3.msra.mxu0 %v586_v45 }
  0x71   : > { %1350 = vmatprep.subr.mxu0 %v1511_v2 }
  0x72   : > { %1351 = vmatpush3.msra.mxu0 %v585_v46 }
  0x73   : > { %1352 = vmatprep.subr.mxu0 %v1511_v2 }
  0x74   : > { %1353 = vmatpush3.msra.mxu0 %v584_v47 }
  0x75   : > { %1354 = vmatprep.subr.mxu0 %v1511_v2 }
  0x76   : > { %1355 = vmatpush3.msra.mxu0 %v583_v48 }
  0x77   : > { %1356 = vmatprep.subr.mxu0 %v1511_v2 }
  0x78   : > { %1357 = vmatpush3.msra.mxu0 %v582_v49 }
  0x79   : > { %1359 = vmatmul.mubr.f32.vlgmr.msra.gmra.mxu0 %v740_v51 }
  0xd7   : > { %v843_v13 = vpop.permute.xlu0 %842 }
  0xdb   : > { %v848_v14 = vpop.permute.xlu0 %847 }
  0xf5   : > { %v492_v56 = vpop.f32.mrf.mxu0 }
  0xf6   : > { %v813_v60 = vrot.slane %v492_v56, 7 }
  0xf7   : > { %v1220_v57 = vpop.f32.mrf.mxu0  ;;  %v578_v58 = vpop.f32.mrf.mxu1 }
  0xf9   : > { %v1255_v59 = vpop.f32.mrf.mxu1 }
 0x118   : > { %v664_v61 = vpop.f32.mrf.mxu0  ;;  %v735_v62 = vpop.f32.mrf.mxu1 }
 0x119   : > { %v816_v63 = vsel %vm815_vm2, %v735_v62, %v813_v60  ;;  %v818_v4 = vrot.slane %v664_v61, 1 }
 0x11a   : > { %v825_v0 = vadd.f32 %v816_v63, %v578_v58  ;;  %v1290_v1 = vpop.f32.mrf.mxu0  ;;  %v1325_v2 = vpop.f32.mrf.mxu1 }
 0x139   : > { %v808_v3 = vpop.f32.mrf.mxu0 }
 0x13a   : > { %v821_v5 = vrot.slane %v808_v3, 1 }
 0x13b   : > { %v1360_v6 = vpop.f32.mrf.mxu0 }
 0x13c   : > { %v824_v7 = vsel %vm823_vm3, %v818_v4, %v821_v5 }
 0x13d   : > { %v826_v9 = vadd.f32 %v825_v0, %v824_v7 }
 0x13f   : > { %v834_v10 = vadd.f32 %v1088_v8, %v826_v9 }
 0x141   : > { %v835_v11 = vmax.f32 %v834_v10, 0.0 }
 0x143   : > { %1361 = vmatprep.subr.msk.mxu1 %vm850_vm1, %v835_v11 }
 0x144   : > { %1362 = vmatpush3.xpose.msk.msra.mxu1 %vm850_vm1, %v835_v11 }
 0x147   : > { %1364 = vmatmul.mubr.msk.f32.vlgmr.msra.gmra.mxu1 %vm850_vm1, %v837_v12 }
 0x207   : > { %v1365_v15 = vpop.f32.mrf.mxu1 }
 0x208   : > { %v932_v16 = vadd.f32 %v1365_v15, %v848_v14 }
 0x209   : > { %v926_v17 = vpop.f32.mrf.mxu1 }
 0x20a   : > { %v1093_v18 = vmul.f32 -1.442695, %v932_v16  ;;  %v927_v19 = vadd.f32 %v926_v17, %v843_v13 }
 0x20c   : > { %1425 = vpow2.f32 %v1093_v18  ;;  %v1092_v20 = vmul.f32 -1.442695, %v927_v19 }
 0x20e   : > { %1427 = vpow2.f32 %v1092_v20 }
 0x219   : > { %v1426_v21 = vpop.eup %1425 }
 0x21a   : > { %v942_v22 = vadd.f32 1.0, %v1426_v21 }
 0x21b   : > { %v1428_v23 = vpop.eup %1427 }
 0x21c   : > { %1429 = vrcp.f32 %v942_v22  ;;  %v941_v24 = vadd.f32 1.0, %v1428_v23 }
 0x21e   : > { %1431 = vrcp.f32 %v941_v24 }
 0x229   : > { %v1430_v30 = vpop.eup %1429 }
 0x22a   : > { %v952_v33 = vmul.f32 %v1430_v30, %v949_v28 }
 0x22b   : > { %v1432_v31 = vpop.eup %1431 }
 0x22c   : > { %v951_v32 = vmul.f32 %v1432_v31, %v949_v28  ;;  %v956_v34 = vrot.slane %v1432_v31, %v955_v29 }
 0x22e   : > { %v957_v35 = vmul.f32 %v956_v34, %v951_v32  ;;  %v958_v36 = vmul.f32 %v956_v34, %v952_v33 }
 0x230   : > { %960 = vst.msk [vmem:[%s387_s27 - $0x1] sm:$0xfe] %vm959_vm4, %v957_v35 }
 0x231   : > { %962 = vst.msk [vmem:[%s387_s27 + $0x7] sm:$0x1] %vm961_vm5, %v958_v36 }
 0x232   : > { %1446 = shalt.err (!%p1443_p5)
}
 0x233   : > { %s1447_s26 = scalar_lea.hbm %s2006_s29, 128  ;;  %s1451_s23 = scalar_lea.hbm %s2055_s9, 256 }
 0x234   : > { %p1448_p6 = scmp.ne.s32.totalorder %s2006_s29, %s1447_s26  ;;  %p1452_p10 = scmp.lt.s32.totalorder %s2006_s29, %s2055_s9 }
 0x235   : > { %p1453_p11 = scmp.lt.s32.totalorder %s1451_s23, %s1447_s26 }
 0x236   : > { %p1449_p7 = pnand %p1448_p6, %p1605_p4 }
 0x237   : > { %p1454_p12 = por %p1453_p11, %p1452_p10 }
 0x238   : > { %p1450_p9 = pneg %p1449_p7 }
 0x23a   : > { %p1455_p13 = pnand %p1454_p12, %p1450_p9 }
 0x23c   : > { %1458 = shalt.err (!%p1455_p13)
}
 0x23d   : > { %1366 = dma.vmem_to_hbm [thread:$0]  (%p1605_p4), %s979_s28, 128, %s2006_s29, %s964_s15  }
 0x23e PF: > { %p1372_p0 = scmp.ge.s32.totalorder %s1509_s14, 2  ;;  %s990_s12 = sand.u32 1, %s1489_s30  }
 0x23f   : > { %s991_s20 = scalar_lea.sflag [#allocation3], %s990_s12 }
 0x240   : > { %p1369_p1 = pnand %p1372_p0, %p1612_p8 }
 0x242   : > { %p1370_p2 = pneg %p1369_p1 }
 0x244   : > { %1484 = dma.done.wait (%p1370_p2), %s991_s20, 128  }
 0x245   : > { %1486 = vsyncadd (%p1370_p2), %s991_s20, 4294967168  ;;  %s22_s14 = sadd.s32 1, %s1509_s14   ;;  %s2058_s30 = smov %s1493_s10 }
 0x246   : > { %p19_p3 = scmp.ge.s32.totalorder %s22_s14, 4   ;;  %s2059_s10 = smov %s1497_s11 }
 0x247   : > { %s2060_s11 = smov %s1618_s22  ;;  %s2061_s12 = smov %s1505_s13 }
 0x248   : > { %s2062_s13 = smov %s2064_s17  ;;  %21 = sbr.rel (!%p19_p3) target bundleno = 4 (0x4), region = 97 }
 0x24d   :  { %996 = vsyncpa [#allocation3], 1 }
 0x24e   :  { %998 = vsyncpa [#allocation3 + $0x1], 1 }

</bundles_post_ra>
